<compile_context>
chip_gen: v7x
topology: tpu7x:2x2x1
jax: 0.10.0
libtpu: 0.0.40
codegen_flags: <defaults>
</compile_context>

<pallas_src>
import functools
from typing import NamedTuple

import jax
import jax.numpy as jnp
from jax.experimental import pallas as pl
from jax.experimental.pallas import tpu as pltpu

_LANE = 128
_SUBLANE = 8


def _round_up(x, m):
    return ((x + m - 1) // m) * m


def _mlp_kernel(x_ref, w1_ref, w2_ref, w3_ref, bias_ref, o_ref):
    """Fused 3-layer MLP on one batch tile: relu(relu(x@W1+b1)@W2+b2)@W3+b3."""
    f1 = w1_ref.shape[1]
    f2 = w2_ref.shape[1]
    a = w3_ref.shape[1]

    # x arrives in its source dtype (f32); cast to the matmul operand dtype in-kernel so the
    # wrapper never emits a separate cast op for the activations.
    x = x_ref[...].astype(w1_ref.dtype)

    # Biases live stacked in one f32 block: row 0 = b1, row 1 = b2, row 2 = b3.
    h1 = jnp.dot(x, w1_ref[...], preferred_element_type=jnp.float32) + bias_ref[0:1, :f1]
    h1 = jnp.maximum(h1, 0.0).astype(w2_ref.dtype)       # relu in f32, cast for MXU
    h2 = jnp.dot(h1, w2_ref[...], preferred_element_type=jnp.float32) + bias_ref[1:2, :f2]
    h2 = jnp.maximum(h2, 0.0).astype(w3_ref.dtype)
    out = jnp.dot(h2, w3_ref[...], preferred_element_type=jnp.float32) + bias_ref[2:3, :a]
    o_ref[...] = out.astype(o_ref.dtype)


class GenericNetworkParams(NamedTuple):
    w1: jax.Array    # [D_in, F1p]                    compute dtype
    w2: jax.Array    # [F1p,  F2p]                    compute dtype
    w3: jax.Array    # [F2p,  Ap ]                    compute dtype
    bias: jax.Array  # [3, max(F1p, F2p, Ap)] float32 (row0=b1, row1=b2, row2=b3)


def prepare_params(w1, b1, w2, b2, w3, b3, *,
                   compute_dtype=jnp.bfloat16, pad_output_lanes=False):
    """One-time parameter packing (hoisted out of the per-call forward).

    Hidden dims are rounded up to a multiple of 8 (zero columns stay exact zeros through
    relu); D_in is left unpadded.  The output dim is padded to 128 lanes only when
    pad_output_lanes=True, otherwise kept at its natural width.  Matmul operands are cast
    to `compute_dtype` (bf16 by default on every TPU generation; f32 accumulation and the
    f32 bias/relu epilogue are unchanged); biases stay f32.

    Returns (GenericNetworkParams, n_actions).
    """
    D_in, F1 = w1.shape
    F2 = w2.shape[1]
    A = w3.shape[1]
    F1p = _round_up(F1, _SUBLANE)
    F2p = _round_up(F2, _SUBLANE)
    Ap = _round_up(A, _LANE) if pad_output_lanes else A

    cd = compute_dtype
    w1p = jnp.zeros((D_in, F1p), cd).at[:, :F1].set(w1.astype(cd))
    w2p = jnp.zeros((F1p, F2p), cd).at[:F1, :F2].set(w2.astype(cd))
    w3p = jnp.zeros((F2p, Ap), cd).at[:F2, :A].set(w3.astype(cd))

    bmax = max(F1p, F2p, Ap)
    bias = jnp.zeros((3, bmax), jnp.float32)
    bias = bias.at[0, :F1].set(b1.astype(jnp.float32))
    bias = bias.at[1, :F2].set(b2.astype(jnp.float32))
    bias = bias.at[2, :A].set(b3.astype(jnp.float32))

    return GenericNetworkParams(w1p, w2p, w3p, bias), A


@functools.partial(jax.jit, static_argnames=("n_actions", "batch_tile", "megacore"))
def generic_network_forward(x, params, *, n_actions, batch_tile=None, megacore=False):
    """Fused MLP forward: x [B, D_in] f32, params from prepare_params() -> [B, n_actions] f32.

    megacore=True (v7x) forces >=2 even grid steps so both TensorCores get work; on
    single-TC chips (v5e/v6e) leave it False so a small batch runs as a single grid step.
    """
    x = jnp.asarray(x, jnp.float32)
    B, D_in = x.shape
    assert params.w1.shape[0] == D_in, "input feature dim mismatch"
    Ap = params.w3.shape[1]

    # Batch tiling: multiple of 8 sublanes, large cap (per-block footprint is tiny, far
    # below every generation's scoped-VMEM default, so no vmem_limit_bytes needed).
    Bp = _round_up(B, _SUBLANE)
    cap = 2048
    if batch_tile is None:
        if megacore and Bp >= 2 * _SUBLANE:
            n_steps = max(2, 2 * (-(-Bp // (2 * cap))))          # even, >= 2
            batch_tile = _round_up(-(-Bp // n_steps), _SUBLANE)
        else:
            batch_tile = min(cap, Bp)
    batch_tile = _round_up(batch_tile, _SUBLANE)
    Bp = _round_up(Bp, batch_tile)

    # Only per-call data op: pad batch rows when B isn't already tile-aligned.
    xp = x if Bp == B else jnp.zeros((Bp, D_in), x.dtype).at[:B].set(x)

    grid = (Bp // batch_tile,)
    out_padded = pl.pallas_call(
        _mlp_kernel,
        out_shape=jax.ShapeDtypeStruct((Bp, Ap), jnp.float32),
        grid_spec=pl.GridSpec(
            grid=grid,
            in_specs=[
                # activations: tiled over batch (last dim = full array dim -> legal block)
                pl.BlockSpec((batch_tile, D_in), lambda i: (i, 0)),
                # weights / stacked biases: constant index_map -> fetched once, VMEM-resident
                pl.BlockSpec(params.w1.shape, lambda i: (0, 0)),
                pl.BlockSpec(params.w2.shape, lambda i: (0, 0)),
                pl.BlockSpec(params.w3.shape, lambda i: (0, 0)),
                pl.BlockSpec(params.bias.shape, lambda i: (0, 0)),
            ],
            out_specs=pl.BlockSpec((batch_tile, Ap), lambda i: (i, 0)),
        ),
        compiler_params=pltpu.CompilerParams(
            dimension_semantics=("parallel",),
        ),
    )(xp, params.w1, params.w2, params.w3, params.bias)

    out = out_padded
    if Bp != B:
        out = out[:B]
    if Ap != n_actions:
        out = out[:, :n_actions]
    return out


def _init_params(key, input_dim, fc1_dims, fc2_dims, n_actions):
    """Deterministic synthetic init (PyTorch-Linear-like uniform fan-in bounds)."""
    ks = jax.random.split(key, 6)

    def lin(kw, kb, fan_in, fan_out):
        bound = 1.0 / jnp.sqrt(fan_in)
        w = jax.random.uniform(kw, (fan_in, fan_out), jnp.float32, -bound, bound)
        b = jax.random.uniform(kb, (fan_out,), jnp.float32, -bound, bound)
        return w, b

    w1, b1 = lin(ks[0], ks[1], input_dim, fc1_dims)
    w2, b2 = lin(ks[2], ks[3], fc1_dims, fc2_dims)
    w3, b3 = lin(ks[4], ks[5], fc2_dims, n_actions)
    return w1, b1, w2, b2, w3, b3


def _reference_forward(x, w1, b1, w2, b2, w3, b3):
    h1 = jnp.maximum(x @ w1 + b1, 0.0)
    h2 = jnp.maximum(h1 @ w2 + b2, 0.0)
    return h2 @ w3 + b3


if __name__ == "__main__":
    # GenericNetwork(lr, input_dims=(8,), fc1_dims=32, fc2_dims=32, n_actions=2)
    batch, input_dim, fc1_dims, fc2_dims, n_actions = 8, 8, 32, 32, 2

    key = jax.random.PRNGKey(0)
    k_obs, k_params, k_obs2 = jax.random.split(key, 3)

    obs = jax.random.normal(k_obs, (batch, input_dim), dtype=jnp.float32)
    raw = _init_params(k_params, input_dim, fc1_dims, fc2_dims, n_actions)
    ref = _reference_forward(obs, *raw)

    # f32 operand path (exact vs reference; zero-padding contributes exact zeros).
    p_f32, A = prepare_params(*raw, compute_dtype=jnp.float32)
    out = jax.block_until_ready(generic_network_forward(obs, p_f32, n_actions=A))
    assert out.shape == (batch, n_actions)
    assert jnp.allclose(out, ref, atol=1e-5, rtol=1e-5), "f32 mismatch vs JAX reference"

    # Default bf16-operand path (all generations): f32 accumulate/epilogue, loose tolerance.
    p_bf16, _ = prepare_params(*raw)
    out_bf16 = jax.block_until_ready(generic_network_forward(obs, p_bf16, n_actions=A))
    assert out_bf16.shape == (batch, n_actions)
    assert jnp.allclose(out_bf16, ref, atol=1e-1, rtol=1e-1), "bf16 mismatch vs reference"

    # Lane-padded-output variant + ragged larger batch (exercises batch padding).
    p_pad, _ = prepare_params(*raw, compute_dtype=jnp.float32, pad_output_lanes=True)
    obs_big = jax.random.normal(k_obs2, (300, input_dim), dtype=jnp.float32)
    ref_big = _reference_forward(obs_big, *raw)
    out_big = jax.block_until_ready(generic_network_forward(obs_big, p_pad, n_actions=A))
    assert out_big.shape == (300, n_actions)
    assert jnp.allclose(out_big, ref_big, atol=1e-5, rtol=1e-5), "padded-out mismatch"

    # megacore path (v7x: 2-way batch split -> 2 parallel grid steps); harmless on 1-TC chips.
    out_mc = jax.block_until_ready(
        generic_network_forward(obs_big, p_bf16, n_actions=A, megacore=True))
    assert out_mc.shape == (300, n_actions)
    assert jnp.allclose(out_mc, ref_big, atol=1e-1, rtol=1e-1), "megacore mismatch"

    # TODO(synk): the module's Adam optimizer / .to(device) transfer are host-side training
    # machinery, not part of forward, and are intentionally not translated.
    print("KERNEL_OK")
</pallas_src>

<mosaic_0001>
module attributes {stable_mosaic.version = 11 : i64} {
  func.func @_mlp_kernel(%arg0: i32, %arg1: memref<8x8xf32, #tpu.memory_space<vmem>>, %arg2: memref<8x32xf32, #tpu.memory_space<vmem>>, %arg3: memref<32x32xf32, #tpu.memory_space<vmem>>, %arg4: memref<32x2xf32, #tpu.memory_space<vmem>>, %arg5: memref<3x32xf32, #tpu.memory_space<vmem>>, %arg6: memref<8x2xf32, #tpu.memory_space<vmem>>) attributes {dimension_semantics = [#tpu.dimension_semantics<parallel>], iteration_bounds = array<i64: 1>, scalar_prefetch = 0 : i64, scratch_operands = 0 : i64, tpu.core_type = #tpu.core_type<tc>, window_params = [{transform_indices = @transform_0, window_bounds = array<i64: 8, 8>}, {pipeline_mode = #tpu.pipeline_mode<synchronous>, transform_indices = @transform_1, window_bounds = array<i64: 8, 32>}, {pipeline_mode = #tpu.pipeline_mode<synchronous>, transform_indices = @transform_2, window_bounds = array<i64: 32, 32>}, {pipeline_mode = #tpu.pipeline_mode<synchronous>, transform_indices = @transform_3, window_bounds = array<i64: 32, 2>}, {pipeline_mode = #tpu.pipeline_mode<synchronous>, transform_indices = @transform_4, window_bounds = array<i64: 3, 32>}, {transform_indices = @transform_5, window_bounds = array<i64: 8, 2>}]} {
    %c0 = arith.constant 0 : index
    %c0_0 = arith.constant 0 : index
    %0 = vector.load %arg1[%c0, %c0_0] : memref<8x8xf32, #tpu.memory_space<vmem>>, vector<8x8xf32>
    %c0_1 = arith.constant 0 : index
    %c0_2 = arith.constant 0 : index
    %1 = vector.load %arg2[%c0_1, %c0_2] : memref<8x32xf32, #tpu.memory_space<vmem>>, vector<8x32xf32>
    %cst = arith.constant dense<0.000000e+00> : vector<8x32xf32>
    %2 = tpu.matmul %0, %1, %cst {dimension_numbers = #tpu.dot_dimension_numbers<[1], [0], [0], [1], [0, 0, 1, 1], [], []>} : vector<8x8xf32>, vector<8x32xf32>, vector<8x32xf32> -> vector<8x32xf32>
    %c0_3 = arith.constant 0 : index
    %c0_4 = arith.constant 0 : index
    %3 = vector.load %arg5[%c0_3, %c0_4] : memref<3x32xf32, #tpu.memory_space<vmem>>, vector<1x32xf32>
    %4 = vector.broadcast %3 : vector<1x32xf32> to vector<8x32xf32>
    %5 = arith.addf %2, %4 : vector<8x32xf32>
    %cst_5 = arith.constant 0.000000e+00 : f32
    %6 = vector.broadcast %cst_5 : f32 to vector<8x32xf32>
    %7 = arith.maximumf %5, %6 : vector<8x32xf32>
    %c0_6 = arith.constant 0 : index
    %c0_7 = arith.constant 0 : index
    %8 = vector.load %arg3[%c0_6, %c0_7] : memref<32x32xf32, #tpu.memory_space<vmem>>, vector<32x32xf32>
    %cst_8 = arith.constant dense<0.000000e+00> : vector<8x32xf32>
    %9 = tpu.matmul %7, %8, %cst_8 {dimension_numbers = #tpu.dot_dimension_numbers<[1], [0], [0], [1], [0, 0, 1, 1], [], []>} : vector<8x32xf32>, vector<32x32xf32>, vector<8x32xf32> -> vector<8x32xf32>
    %c1 = arith.constant 1 : index
    %c0_9 = arith.constant 0 : index
    %10 = vector.load %arg5[%c1, %c0_9] : memref<3x32xf32, #tpu.memory_space<vmem>>, vector<1x32xf32>
    %11 = vector.broadcast %10 : vector<1x32xf32> to vector<8x32xf32>
    %12 = arith.addf %9, %11 : vector<8x32xf32>
    %cst_10 = arith.constant 0.000000e+00 : f32
    %13 = vector.broadcast %cst_10 : f32 to vector<8x32xf32>
    %14 = arith.maximumf %12, %13 : vector<8x32xf32>
    %c0_11 = arith.constant 0 : index
    %c0_12 = arith.constant 0 : index
    %15 = vector.load %arg4[%c0_11, %c0_12] : memref<32x2xf32, #tpu.memory_space<vmem>>, vector<32x2xf32>
    %cst_13 = arith.constant dense<0.000000e+00> : vector<8x2xf32>
    %16 = tpu.matmul %14, %15, %cst_13 {dimension_numbers = #tpu.dot_dimension_numbers<[1], [0], [0], [1], [0, 0, 1, 1], [], []>} : vector<8x32xf32>, vector<32x2xf32>, vector<8x2xf32> -> vector<8x2xf32>
    %c2 = arith.constant 2 : index
    %c0_14 = arith.constant 0 : index
    %17 = vector.load %arg5[%c2, %c0_14] : memref<3x32xf32, #tpu.memory_space<vmem>>, vector<1x2xf32>
    %18 = vector.broadcast %17 : vector<1x2xf32> to vector<8x2xf32>
    %19 = arith.addf %16, %18 : vector<8x2xf32>
    %c0_15 = arith.constant 0 : index
    %c0_16 = arith.constant 0 : index
    %20 = vector.load %arg6[%c0_15, %c0_16] : memref<8x2xf32, #tpu.memory_space<vmem>>, vector<8x2xf32>
    tpu.vector_store %arg6[%c0_15, %c0_16], %19 {strides = array<i32>} : memref<8x2xf32, #tpu.memory_space<vmem>>, vector<8x2xf32>,
    return
  }
  func.func @transform_0(%arg0: i32) -> (i32, i32) {
    %c0_i32 = arith.constant 0 : i32
    %c0_i32_0 = arith.constant 0 : i32
    return %arg0, %c0_i32 : i32, i32
  }
  func.func @transform_1(%arg0: i32) -> (i32, i32) {
    %c0_i32 = arith.constant 0 : i32
    %c0_i32_0 = arith.constant 0 : i32
    %c0_i32_1 = arith.constant 0 : i32
    return %c0_i32, %c0_i32_0 : i32, i32
  }
  func.func @transform_2(%arg0: i32) -> (i32, i32) {
    %c0_i32 = arith.constant 0 : i32
    %c0_i32_0 = arith.constant 0 : i32
    %c0_i32_1 = arith.constant 0 : i32
    return %c0_i32, %c0_i32_0 : i32, i32
  }
  func.func @transform_3(%arg0: i32) -> (i32, i32) {
    %c0_i32 = arith.constant 0 : i32
    %c0_i32_0 = arith.constant 0 : i32
    %c0_i32_1 = arith.constant 0 : i32
    return %c0_i32, %c0_i32_0 : i32, i32
  }
  func.func @transform_4(%arg0: i32) -> (i32, i32) {
    %c0_i32 = arith.constant 0 : i32
    %c0_i32_0 = arith.constant 0 : i32
    %c0_i32_1 = arith.constant 0 : i32
    return %c0_i32, %c0_i32_0 : i32, i32
  }
  func.func @transform_5(%arg0: i32) -> (i32, i32) {
    %c0_i32 = arith.constant 0 : i32
    %c0_i32_0 = arith.constant 0 : i32
    return %arg0, %c0_i32 : i32, i32
  }
}

</mosaic_0001>

<bundles_post_ra>
// kernel: generic_network_forward.1
= control target key start
LH: loop header
LB: loop body
LE: loop exit
PB: predicated region body
PF: predicated region fallthrough
CT: control target
= control target key end

     0   :  { %10 = vsyncpa [#allocation3], 0  ;;  %s372_s18 = smov [#allocation2]   ;;  %s457_s0 = inlined_call_operand.vmem [shape: f32[8,8], index: 0, kind: input, shape index: {}]   ;;  %s458_s1 = inlined_call_operand.hbm [shape: f32[8,32], index: 1, kind: input, shape index: {}]   ;;  %s459_s2 = inlined_call_operand.vmem [shape: f32[32,32], index: 2, kind: input, shape index: {}]   ;;  %s460_s3 = inlined_call_operand.vmem [shape: f32[32,2], index: 3, kind: input, shape index: {}]   ;;  %s461_s4 = inlined_call_operand.vmem [shape: f32[3,32], index: 4, kind: input, shape index: {}]   ;;  %s462_s5 = inlined_call_operand.vmem [shape: f32[8,2], index: 5, kind: output, shape index: {}]  }
   0x1   :  { %s19_s19 = sshll.u32 %s372_s18, 4  ;;  %s348_s22 = scalar_lea.hbm %s458_s1, 128  ;;  %s20_s19 = int_to_ptr.vmem [resolvable:$true] %s19_s19 }
   0x2   :  { %p349_p0 = scmp.ne.s32.totalorder %s458_s1, %s348_s22  ;;  %p352_p1 = scmp.lt.u32.totalorder %s348_s22, %s458_s1 }
   0x4   :  { %p354_p2 = pnand %p352_p1, %p349_p0 }
   0x6   :  { %357 = shalt.err (!%p354_p2)
}
   0x7   :  { %s358_s27 = scalar_lea.vmem %s20_s19, 128  ;;  %p363_p4 = scmp.lt.s32.totalorder %s20_s19, %s20_s19 }
   0x8   :  { %p359_p3 = scmp.ne.s32.totalorder %s20_s19, %s358_s27  ;;  %p364_p5 = scmp.lt.s32.totalorder %s358_s27, %s358_s27 }
   0xa   :  { %p365_p6 = por %p364_p5, %p363_p4 }
   0xc   :  { %p366_p7 = pnand %p365_p6, %p359_p3 }
   0xe   :  { %369 = shalt.err (!%p366_p7)
}
   0xf   :  { %22 = dma.hbm_to_vmem [thread:$0]  %s458_s1, 128, %s20_s19, [#allocation3]  }
  0x10   :  { %370 = dma.done.wait [#allocation3], 128  }
  0x11   :  { %371 = vsyncadd [#allocation3], 4294967168  ;;  %v373_v0 = vmov 0.0   ;;  %vm374_vm0 = vmmov 0   ;;  %v375_v1 = vmov 0.0|0.0   ;;  %vm39_vm1 = vcmask 64512  }
  0x12   :  { %305 = vmatprep.subr.mxu0 %v373_v0  ;;  %307 = vmatprep.mubr.msk.f32.mxu0 %vm374_vm0, %v373_v0  ;;  %v33_v2 = vld [vmem:[#allocation2] sm:$0xff]  ;;  %v115_v5 = vld [vmem:[%s459_s2 + $0x8] sm:$0xff]  ;;  %v116_v7 = vld [vmem:[%s459_s2 + $0x10] sm:$0xff]  ;;  %vm123_vm2 = vcmask 261120   ;;  %vm280_vm3 = vcmask 15360  }
  0x13   :  { %332 = vmatprep.subr.bf16.mxu1 %v375_v1  ;;  %318 = vmatprep.mubr.msk.f32.mxu1 %vm374_vm0, %v373_v0  ;;  %v32_v3 = vld [vmem:[%s457_s0] sm:$0xff]  ;;  %v117_v8 = vld [vmem:[%s459_s2 + $0x18] sm:$0xff]  ;;  %v199_v11 = vld [vmem:[%s460_s3 + $0x8] sm:$0xff] }
  0x14   :  { %v114_v4 = vld [vmem:[%s459_s2] sm:$0xff]  ;;  %306 = vmatpush3.msra.mxu0 %v33_v2  ;;  %v336_v9 = vpack.c.bf16 %v117_v8, %v116_v7  ;;  %v200_v18 = vld [vmem:[%s460_s3 + $0x10] sm:$0xff]  ;;  %v201_v19 = vld [vmem:[%s460_s3 + $0x18] sm:$0xff] }
  0x15   :  { %308 = vmatmul.mubr.msk.f32.vlgmr.msra.gmra.mrb[0].mxu0 %vm39_vm1, %v32_v3  ;;  %v333_v6 = vpack.c.bf16 %v115_v5, %v114_v4  ;;  %338 = vmatprep.subr.bf16.mxu0 %v375_v1  ;;  %v198_v10 = vld [vmem:[%s460_s3] sm:$0xff]  ;;  %v342_v20 = vpack.c.bf16 %v201_v19, %v200_v18 }
  0x16   :  { %329 = vmatprep.mubr.msk.f32.mxu0 %vm374_vm0, %v373_v0  ;;  %v339_v12 = vpack.c.bf16 %v199_v11, %v198_v10  ;;  %v287_v13 = vld [vmem:[%s461_s4] ss:$0 sm:$0xff]  ;;  %v289_v21 = vld [vmem:[%s461_s4 + $0x1] ss:$0 sm:$0xff]  ;;  %v291_v26 = vld [vmem:[%s461_s4 + $0x2] ss:$0 sm:$0xff] }
  0x17   :  { %334 = vmatpush3.bf16.msra.mxu1 %v333_v6 }
  0x18   :  { %335 = vmatprep.subr.bf16.mxu1 %v375_v1  ;;  %340 = vmatpush3.bf16.msra.mxu0 %v339_v12 }
  0x19   :  { %341 = vmatprep.subr.bf16.mxu0 %v375_v1 }
  0x1b   :  { %337 = vmatpush3.bf16.msra.mxu1 %v336_v9 }
  0x1c   :  { %343 = vmatpush3.bf16.msra.mxu0 %v342_v20 }
  0xe8   :  { %v109_v14 = vpop.f32.mrb[0].mxu0 }
  0xe9   :  { %v110_v15 = vadd.f32 %v287_v13, %v109_v14  ;;  %v309_v16 = vpop.f32.mrb[1].mxu0 }
  0xeb   :  { %v113_v17 = vmax.f32 %v110_v15, 0.0 }
  0xed   :  { %319 = vmatmul.mubr.msk.f32.vlgmr.msra.gmra.mrb[0].mxu1 %vm123_vm2, %v113_v17 }
 0x1c0   :  { %v193_v22 = vpop.f32.mrb[0].mxu1 }
 0x1c1   :  { %v194_v23 = vadd.f32 %v289_v21, %v193_v22  ;;  %v320_v24 = vpop.f32.mrb[1].mxu1 }
 0x1c3   :  { %v197_v25 = vmax.f32 %v194_v23, 0.0 }
 0x1c5   :  { %330 = vmatmul.mubr.msk.f32.vlgmr.msra.gmra.mrb[2].mxu0 %vm123_vm2, %v197_v25 }
 0x298   :  { %v276_v27 = vpop.f32.mrb[2].mxu0 }
 0x299   :  { %v277_v28 = vadd.f32 %v291_v26, %v276_v27  ;;  %v331_v29 = vpop.f32.mrb[3].mxu0 }
 0x29b   :  { %281 = vst.msk [vmem:[%s462_s5] sm:$0xff] %vm280_vm3, %v277_v28 }
 0x29c   :  { %286 = vsyncpa [#allocation3], 1 }

</bundles_post_ra>
